<compile_context>
chip_gen: v7x
topology: tpu7x:2x2x1
jax: 0.10.0
libtpu: 0.0.40
codegen_flags: <defaults>
</compile_context>

<pallas_src>
import jax
import jax.numpy as jnp
from jax.experimental import pallas as pl
from jax.experimental.pallas import tpu as pltpu

STATE_SIZE = 25
HIDDEN = 128
ACTION_SIZE = 6
OUT_PAD = 128          # lane-dense padded output width for layer 3
TM_MAX = 1024          # batch tile (sweep 512-2048; 1024 ~ 85% HBM roofline)


def _round_up(n, m):
    return ((n + m - 1) // m) * m


def _dqn_kernel(x_ref, w1_ref, b1_ref, w2_ref, b2_ref, w3_ref, b3_ref, o_ref):
    # One (TM, STATE_SIZE) batch tile per grid step; weights/biases are
    # VMEM-resident across the grid (constant index_map) and already in the
    # compute dtype, so the only per-step traffic is the x tile in and the
    # out tile back (overlapped by the BlockSpec pipeline). Accumulation,
    # bias add and ReLU stay in f32.
    compute_dtype = w1_ref.dtype
    x = x_ref[...]                                    # already compute_dtype

    h1 = jnp.dot(x, w1_ref[...], preferred_element_type=jnp.float32) + b1_ref[...]
    h1 = jnp.maximum(h1, 0.0).astype(compute_dtype)

    h2 = jnp.dot(h1, w2_ref[...], preferred_element_type=jnp.float32) + b2_ref[...]
    h2 = jnp.maximum(h2, 0.0).astype(compute_dtype)

    # Layer-3 weights are pre-padded to OUT_PAD lanes -> lane-dense unmasked
    # output store and full MXU N utilization.
    out = jnp.dot(h2, w3_ref[...], preferred_element_type=jnp.float32) + b3_ref[...]
    o_ref[...] = out.astype(o_ref.dtype)


def prepare_params(params, *, compute_dtype=jnp.float32):
    """One-time parameter prep (do NOT call per forward):
    pads layer-3 weights/bias to OUT_PAD lanes and casts weights to
    compute_dtype. Biases stay f32 (added after the f32-accumulated dot)."""
    w3p = jnp.zeros((HIDDEN, OUT_PAD), jnp.float32).at[:, :ACTION_SIZE].set(
        params["w3"].astype(jnp.float32))
    b3p = jnp.zeros((1, OUT_PAD), jnp.float32).at[:, :ACTION_SIZE].set(
        params["b3"].astype(jnp.float32))
    return {
        "w1": params["w1"].astype(compute_dtype),
        "b1": params["b1"].astype(jnp.float32),
        "w2": params["w2"].astype(compute_dtype),
        "b2": params["b2"].astype(jnp.float32),
        "w3": w3p.astype(compute_dtype),
        "b3": b3p,
    }


def _choose_tm(batch):
    """Batch tile: multiple of 8 sublanes, capped at TM_MAX, and chosen so the
    grid keeps >= 2 steps whenever the (8-rounded) batch allows it, so v7x's
    two TensorCores both get work."""
    b8 = _round_up(batch, 8)
    if b8 <= 8:
        return 8
    return min(TM_MAX, _round_up((b8 + 1) // 2, 8))


def dqn_forward(x, prep):
    """x: (B, STATE_SIZE). prep: output of prepare_params.

    Returns (B, ACTION_SIZE) float32 Q-values.
    """
    B = x.shape[0]
    compute_dtype = prep["w1"].dtype
    x = x.astype(compute_dtype)

    tm = _choose_tm(B)
    b_pad = _round_up(B, tm)
    if b_pad != B:
        x = jnp.pad(x, ((0, b_pad - B), (0, 0)))
    grid = (b_pad // tm,)

    # Advisory cost estimate for XLA's scheduler around the custom call.
    itemsize = jnp.dtype(compute_dtype).itemsize
    w_elems = STATE_SIZE * HIDDEN + HIDDEN * HIDDEN + HIDDEN * OUT_PAD
    cost = pl.CostEstimate(
        flops=2 * b_pad * w_elems,
        transcendentals=0,
        bytes_accessed=(b_pad * STATE_SIZE * itemsize          # streamed x
                        + b_pad * OUT_PAD * 4                  # streamed out
                        + w_elems * itemsize                   # resident weights
                        + (2 * HIDDEN + OUT_PAD) * 4),         # biases
    )

    resident = lambda shape: pl.BlockSpec(shape, lambda i: (0,) * len(shape))

    out = pl.pallas_call(
        _dqn_kernel,
        out_shape=jax.ShapeDtypeStruct((b_pad, OUT_PAD), jnp.float32),
        grid=grid,
        in_specs=[
            pl.BlockSpec((tm, STATE_SIZE), lambda i: (i, 0)),   # streamed x tile
            resident(prep["w1"].shape), resident(prep["b1"].shape),
            resident(prep["w2"].shape), resident(prep["b2"].shape),
            resident(prep["w3"].shape), resident(prep["b3"].shape),
        ],
        out_specs=pl.BlockSpec((tm, OUT_PAD), lambda i: (i, 0)),
        compiler_params=pltpu.CompilerParams(
            dimension_semantics=("parallel",),     # v7x: shard batch across 2 TCs
            vmem_limit_bytes=32 * 1024 * 1024),    # explicit budget (v5e default is 16 MiB)
        cost_estimate=cost,
    )(x, prep["w1"], prep["b1"], prep["w2"], prep["b2"], prep["w3"], prep["b3"])

    return out[:B, :ACTION_SIZE]


def init_params(key):
    """Deterministic init mimicking PyTorch nn.Linear default:
    U(-1/sqrt(fan_in), 1/sqrt(fan_in)) for both weights and biases.
    Weights stored as (in_features, out_features)."""
    def linear(k, fan_in, fan_out):
        kw, kb = jax.random.split(k)
        bound = 1.0 / jnp.sqrt(fan_in)
        w = jax.random.uniform(kw, (fan_in, fan_out), jnp.float32, -bound, bound)
        b = jax.random.uniform(kb, (1, fan_out), jnp.float32, -bound, bound)
        return w, b

    k1, k2, k3 = jax.random.split(key, 3)
    w1, b1 = linear(k1, STATE_SIZE, HIDDEN)
    w2, b2 = linear(k2, HIDDEN, HIDDEN)
    w3, b3 = linear(k3, HIDDEN, ACTION_SIZE)
    return {"w1": w1, "b1": b1, "w2": w2, "b2": b2, "w3": w3, "b3": b3}


def dqn_reference(x, params):
    h1 = jnp.maximum(x @ params["w1"] + params["b1"], 0.0)
    h2 = jnp.maximum(h1 @ params["w2"] + params["b2"], 0.0)
    return h2 @ params["w3"] + params["b3"]


if __name__ == "__main__":
    key = jax.random.PRNGKey(0)
    kp, kx1, kx2 = jax.random.split(key, 3)

    params = init_params(kp)

    # --- f32 compute path (default; tight tolerances) -----------------------
    prep_f32 = prepare_params(params, compute_dtype=jnp.float32)

    # Small RL-style batch (single grid step).
    batch = 8
    x_small = jax.random.normal(kx1, (batch, STATE_SIZE), dtype=jnp.float32)
    out_small = jax.block_until_ready(dqn_forward(x_small, prep_f32))
    ref_small = dqn_reference(x_small, params)
    assert out_small.shape == (batch, ACTION_SIZE)
    assert jnp.allclose(out_small, ref_small, atol=1e-5, rtol=1e-5), \
        "mismatch vs reference (f32, batch=8)"

    # Larger, non-tile-multiple batch: exercises >=2 grid steps + batch padding.
    batch2 = 300
    x_big = jax.random.normal(kx2, (batch2, STATE_SIZE), dtype=jnp.float32)
    out_big = jax.block_until_ready(dqn_forward(x_big, prep_f32))
    ref_big = dqn_reference(x_big, params)
    assert out_big.shape == (batch2, ACTION_SIZE)
    assert jnp.allclose(out_big, ref_big, atol=1e-5, rtol=1e-5), \
        "mismatch vs reference (f32, batch=300)"

    # --- bf16 MXU-operand path (recommended on v6e/v7x; widened tolerance) --
    prep_bf16 = prepare_params(params, compute_dtype=jnp.bfloat16)
    out_bf16 = jax.block_until_ready(dqn_forward(x_big, prep_bf16))
    assert out_bf16.shape == (batch2, ACTION_SIZE)
    assert jnp.allclose(out_bf16, ref_big, atol=7.5e-2, rtol=7.5e-2), \
        "mismatch vs reference (bf16, batch=300)"

    print("KERNEL_OK")
</pallas_src>

<mosaic_0001>
module attributes {stable_mosaic.version = 11 : i64} {
  func.func @_dqn_kernel(%arg0: i32, %arg1: memref<8x25xf32, #tpu.memory_space<vmem>>, %arg2: memref<25x128xf32, #tpu.memory_space<vmem>>, %arg3: memref<1x128xf32, #tpu.memory_space<vmem>>, %arg4: memref<128x128xf32, #tpu.memory_space<vmem>>, %arg5: memref<1x128xf32, #tpu.memory_space<vmem>>, %arg6: memref<128x128xf32, #tpu.memory_space<vmem>>, %arg7: memref<1x128xf32, #tpu.memory_space<vmem>>, %arg8: memref<8x128xf32, #tpu.memory_space<vmem>>) attributes {dimension_semantics = [#tpu.dimension_semantics<parallel>], iteration_bounds = array<i64: 1>, scalar_prefetch = 0 : i64, scratch_operands = 0 : i64, tpu.core_type = #tpu.core_type<tc>, window_params = [{transform_indices = @transform_0, window_bounds = array<i64: 8, 25>}, {pipeline_mode = #tpu.pipeline_mode<synchronous>, transform_indices = @transform_1, window_bounds = array<i64: 25, 128>}, {pipeline_mode = #tpu.pipeline_mode<synchronous>, transform_indices = @transform_2, window_bounds = array<i64: 1, 128>}, {pipeline_mode = #tpu.pipeline_mode<synchronous>, transform_indices = @transform_3, window_bounds = array<i64: 128, 128>}, {pipeline_mode = #tpu.pipeline_mode<synchronous>, transform_indices = @transform_4, window_bounds = array<i64: 1, 128>}, {pipeline_mode = #tpu.pipeline_mode<synchronous>, transform_indices = @transform_5, window_bounds = array<i64: 128, 128>}, {pipeline_mode = #tpu.pipeline_mode<synchronous>, transform_indices = @transform_6, window_bounds = array<i64: 1, 128>}, {transform_indices = @transform_7, window_bounds = array<i64: 8, 128>}]} {
    %c0 = arith.constant 0 : index
    %c0_0 = arith.constant 0 : index
    %0 = vector.load %arg1[%c0, %c0_0] : memref<8x25xf32, #tpu.memory_space<vmem>>, vector<8x25xf32>
    %c0_1 = arith.constant 0 : index
    %c0_2 = arith.constant 0 : index
    %1 = vector.load %arg2[%c0_1, %c0_2] : memref<25x128xf32, #tpu.memory_space<vmem>>, vector<25x128xf32>
    %cst = arith.constant dense<0.000000e+00> : vector<8x128xf32>
    %2 = tpu.matmul %0, %1, %cst {dimension_numbers = #tpu.dot_dimension_numbers<[1], [0], [0], [1], [0, 0, 1, 1], [], []>} : vector<8x25xf32>, vector<25x128xf32>, vector<8x128xf32> -> vector<8x128xf32>
    %c0_3 = arith.constant 0 : index
    %c0_4 = arith.constant 0 : index
    %3 = vector.load %arg3[%c0_3, %c0_4] : memref<1x128xf32, #tpu.memory_space<vmem>>, vector<1x128xf32>
    %4 = vector.broadcast %3 : vector<1x128xf32> to vector<8x128xf32>
    %5 = arith.addf %2, %4 : vector<8x128xf32>
    %cst_5 = arith.constant 0.000000e+00 : f32
    %6 = vector.broadcast %cst_5 : f32 to vector<8x128xf32>
    %7 = arith.maximumf %5, %6 : vector<8x128xf32>
    %c0_6 = arith.constant 0 : index
    %c0_7 = arith.constant 0 : index
    %8 = vector.load %arg4[%c0_6, %c0_7] : memref<128x128xf32, #tpu.memory_space<vmem>>, vector<128x128xf32>
    %cst_8 = arith.constant dense<0.000000e+00> : vector<8x128xf32>
    %9 = tpu.matmul %7, %8, %cst_8 {dimension_numbers = #tpu.dot_dimension_numbers<[1], [0], [0], [1], [0, 0, 1, 1], [], []>} : vector<8x128xf32>, vector<128x128xf32>, vector<8x128xf32> -> vector<8x128xf32>
    %c0_9 = arith.constant 0 : index
    %c0_10 = arith.constant 0 : index
    %10 = vector.load %arg5[%c0_9, %c0_10] : memref<1x128xf32, #tpu.memory_space<vmem>>, vector<1x128xf32>
    %11 = vector.broadcast %10 : vector<1x128xf32> to vector<8x128xf32>
    %12 = arith.addf %9, %11 : vector<8x128xf32>
    %cst_11 = arith.constant 0.000000e+00 : f32
    %13 = vector.broadcast %cst_11 : f32 to vector<8x128xf32>
    %14 = arith.maximumf %12, %13 : vector<8x128xf32>
    %c0_12 = arith.constant 0 : index
    %c0_13 = arith.constant 0 : index
    %15 = vector.load %arg6[%c0_12, %c0_13] : memref<128x128xf32, #tpu.memory_space<vmem>>, vector<128x128xf32>
    %cst_14 = arith.constant dense<0.000000e+00> : vector<8x128xf32>
    %16 = tpu.matmul %14, %15, %cst_14 {dimension_numbers = #tpu.dot_dimension_numbers<[1], [0], [0], [1], [0, 0, 1, 1], [], []>} : vector<8x128xf32>, vector<128x128xf32>, vector<8x128xf32> -> vector<8x128xf32>
    %c0_15 = arith.constant 0 : index
    %c0_16 = arith.constant 0 : index
    %17 = vector.load %arg7[%c0_15, %c0_16] : memref<1x128xf32, #tpu.memory_space<vmem>>, vector<1x128xf32>
    %18 = vector.broadcast %17 : vector<1x128xf32> to vector<8x128xf32>
    %19 = arith.addf %16, %18 : vector<8x128xf32>
    %c0_17 = arith.constant 0 : index
    %c0_18 = arith.constant 0 : index
    %20 = vector.load %arg8[%c0_17, %c0_18] : memref<8x128xf32, #tpu.memory_space<vmem>>, vector<8x128xf32>
    tpu.vector_store %arg8[%c0_17, %c0_18], %19 {strides = array<i32>} : memref<8x128xf32, #tpu.memory_space<vmem>>, vector<8x128xf32>,
    return
  }
  func.func @transform_0(%arg0: i32) -> (i32, i32) {
    %c0_i32 = arith.constant 0 : i32
    %c0_i32_0 = arith.constant 0 : i32
    return %arg0, %c0_i32 : i32, i32
  }
  func.func @transform_1(%arg0: i32) -> (i32, i32) {
    %c0_i32 = arith.constant 0 : i32
    %c0_i32_0 = arith.constant 0 : i32
    %c0_i32_1 = arith.constant 0 : i32
    return %c0_i32, %c0_i32_0 : i32, i32
  }
  func.func @transform_2(%arg0: i32) -> (i32, i32) {
    %c0_i32 = arith.constant 0 : i32
    %c0_i32_0 = arith.constant 0 : i32
    %c0_i32_1 = arith.constant 0 : i32
    return %c0_i32, %c0_i32_0 : i32, i32
  }
  func.func @transform_3(%arg0: i32) -> (i32, i32) {
    %c0_i32 = arith.constant 0 : i32
    %c0_i32_0 = arith.constant 0 : i32
    %c0_i32_1 = arith.constant 0 : i32
    return %c0_i32, %c0_i32_0 : i32, i32
  }
  func.func @transform_4(%arg0: i32) -> (i32, i32) {
    %c0_i32 = arith.constant 0 : i32
    %c0_i32_0 = arith.constant 0 : i32
    %c0_i32_1 = arith.constant 0 : i32
    return %c0_i32, %c0_i32_0 : i32, i32
  }
  func.func @transform_5(%arg0: i32) -> (i32, i32) {
    %c0_i32 = arith.constant 0 : i32
    %c0_i32_0 = arith.constant 0 : i32
    %c0_i32_1 = arith.constant 0 : i32
    return %c0_i32, %c0_i32_0 : i32, i32
  }
  func.func @transform_6(%arg0: i32) -> (i32, i32) {
    %c0_i32 = arith.constant 0 : i32
    %c0_i32_0 = arith.constant 0 : i32
    %c0_i32_1 = arith.constant 0 : i32
    return %c0_i32, %c0_i32_0 : i32, i32
  }
  func.func @transform_7(%arg0: i32) -> (i32, i32) {
    %c0_i32 = arith.constant 0 : i32
    %c0_i32_0 = arith.constant 0 : i32
    return %arg0, %c0_i32 : i32, i32
  }
}

</mosaic_0001>

<bundles_post_ra>
// kernel: tpu_custom_call.1
= control target key start
LH: loop header
LB: loop body
LE: loop exit
PB: predicated region body
PF: predicated region fallthrough
CT: control target
= control target key end

     0   :  { %12 = vsyncpa [#allocation3], 0  ;;  %s835_s0 = inlined_call_operand.hbm [shape: f32[8,25], index: 0, kind: input, shape index: {}]   ;;  %s836_s1 = inlined_call_operand.hbm [shape: f32[25,128], index: 1, kind: input, shape index: {}]   ;;  %s837_s2 = inlined_call_operand.vmem [shape: f32[1,128], index: 2, kind: input, shape index: {}]   ;;  %s838_s3 = inlined_call_operand.hbm [shape: f32[128,128], index: 3, kind: input, shape index: {}]   ;;  %s839_s4 = inlined_call_operand.vmem [shape: f32[1,128], index: 4, kind: input, shape index: {}]   ;;  %s840_s5 = inlined_call_operand.hbm [shape: f32[128,128], index: 5, kind: input, shape index: {}]   ;;  %s841_s6 = inlined_call_operand.vmem [shape: f32[1,128], index: 6, kind: input, shape index: {}]   ;;  %s842_s7 = inlined_call_operand.hbm [shape: f32[8,128], index: 7, kind: output, shape index: {}]  }
   0x1   :  { %13 = vsyncpa [#allocation6], 0 }
   0x2   :  { %14 = vsyncpa [#allocation9], 0 }
   0x3   :  { %15 = vsyncpa [#allocation4], 0  ;;  %s685_s24 = smov [#allocation5]   ;;  %s567_s28 = scalar_lea.hbm %s836_s1, 512 }
   0x4   :  { %s31_s25 = sshll.u32 %s685_s24, 4  ;;  %p568_p0 = scmp.ne.s32.totalorder %s836_s1, %s567_s28  ;;  %s32_s25 = int_to_ptr.vmem [resolvable:$true] %s31_s25 }
   0x5   :  { %p571_p1 = scmp.lt.u32.totalorder %s567_s28, %s836_s1 }
   0x7   :  { %p573_p2 = pnand %p571_p1, %p568_p0 }
   0x9   :  { %576 = shalt.err (!%p573_p2)
}
   0xa   :  { %s577_s10 = scalar_lea.vmem %s32_s25, 512  ;;  %p582_p4 = scmp.lt.s32.totalorder %s32_s25, %s32_s25 }
   0xb   :  { %p578_p3 = scmp.ne.s32.totalorder %s32_s25, %s577_s10  ;;  %p583_p5 = scmp.lt.s32.totalorder %s577_s10, %s577_s10 }
   0xd   :  { %p584_p6 = por %p583_p5, %p582_p4 }
   0xf   :  { %p585_p7 = pnand %p584_p6, %p578_p3 }
  0x11   :  { %588 = shalt.err (!%p585_p7)
}
  0x12   :  { %s686_s11 = smov 128   ;;  %s687_s12 = smov 8  }
  0x13   :  { %37 = dma.hbm_to_vmem [thread:$0]  %s836_s1, 512, %s32_s25, [#allocation6], %s686_s11, %s686_s11, %s687_s12  }
  0x14   :  { %s688_s15 = smov [#allocation2]   ;;  %s689_s17 = smov [#allocation7]  }
  0x15   :  { %s22_s16 = sshll.u32 %s688_s15, 4  ;;  %s45_s18 = sshll.u32 %s689_s17, 4  ;;  %s23_s16 = int_to_ptr.vmem [resolvable:$true] %s22_s16  ;;  %s46_s18 = int_to_ptr.vmem [resolvable:$true] %s45_s18 }
  0x16   :  { %s589_s21 = scalar_lea.hbm %s835_s0, 128 }
  0x17   :  { %p590_p8 = scmp.ne.s32.totalorder %s835_s0, %s589_s21  ;;  %p593_p9 = scmp.lt.u32.totalorder %s589_s21, %s835_s0 }
  0x19   :  { %p595_p10 = pnand %p593_p9, %p590_p8 }
  0x1b   :  { %598 = shalt.err (!%p595_p10)
}
  0x1c   :  { %s599_s1 = scalar_lea.vmem %s23_s16, 128  ;;  %p604_p12 = scmp.lt.s32.totalorder %s23_s16, %s23_s16 }
  0x1d   :  { %p600_p11 = scmp.ne.s32.totalorder %s23_s16, %s599_s1  ;;  %p605_p13 = scmp.lt.s32.totalorder %s599_s1, %s599_s1 }
  0x1f   :  { %p606_p0 = por %p605_p13, %p604_p12 }
  0x21   :  { %p607_p1 = pnand %p606_p0, %p600_p11 }
  0x23   :  { %610 = shalt.err (!%p607_p1)
}
  0x24   :  { %25 = dma.hbm_to_vmem [thread:$0]  %s835_s0, 128, %s23_s16, [#allocation3]  }
  0x25   :  { %s611_s30 = scalar_lea.hbm %s838_s3, 2048 }
  0x26   :  { %p612_p2 = scmp.ne.s32.totalorder %s838_s3, %s611_s30  ;;  %p615_p3 = scmp.lt.u32.totalorder %s611_s30, %s838_s3 }
  0x28   :  { %p617_p4 = pnand %p615_p3, %p612_p2 }
  0x2a   :  { %620 = shalt.err (!%p617_p4)
}
  0x2b   :  { %s621_s14 = scalar_lea.vmem %s46_s18, 2048  ;;  %p626_p6 = scmp.lt.s32.totalorder %s46_s18, %s46_s18 }
  0x2c   :  { %p622_p5 = scmp.ne.s32.totalorder %s46_s18, %s621_s14  ;;  %p627_p7 = scmp.lt.s32.totalorder %s621_s14, %s621_s14 }
  0x2e   :  { %p628_p8 = por %p627_p7, %p626_p6 }
  0x30   :  { %p629_p9 = pnand %p628_p8, %p622_p5 }
  0x32   :  { %632 = shalt.err (!%p629_p9)
}
  0x33   :  { %51 = dma.hbm_to_vmem [thread:$0]  %s838_s3, 2048, %s46_s18, [#allocation6], %s686_s11, %s686_s11, %s687_s12  }
  0x34   :  { %s690_s16 = smov [#allocation8]   ;;  %s633_s21 = scalar_lea.hbm %s840_s5, 2048 }
  0x35   :  { %s59_s17 = sshll.u32 %s690_s16, 4  ;;  %p634_p10 = scmp.ne.s32.totalorder %s840_s5, %s633_s21  ;;  %s60_s17 = int_to_ptr.vmem [resolvable:$true] %s59_s17 }
  0x36   :  { %p637_p11 = scmp.lt.u32.totalorder %s633_s21, %s840_s5 }
  0x38   :  { %p639_p12 = pnand %p637_p11, %p634_p10 }
  0x3a   :  { %642 = shalt.err (!%p639_p12)
}
  0x3b   :  { %s643_s1 = scalar_lea.vmem %s60_s17, 2048  ;;  %p648_p0 = scmp.lt.s32.totalorder %s60_s17, %s60_s17 }
  0x3c   :  { %p644_p13 = scmp.ne.s32.totalorder %s60_s17, %s643_s1  ;;  %p649_p1 = scmp.lt.s32.totalorder %s643_s1, %s643_s1 }
  0x3e   :  { %p650_p2 = por %p649_p1, %p648_p0 }
  0x40   :  { %p651_p3 = pnand %p650_p2, %p644_p13 }
  0x42   :  { %654 = shalt.err (!%p651_p3)
}
  0x43   :  { %65 = dma.hbm_to_vmem [thread:$0]  %s840_s5, 2048, %s60_s17, [#allocation9], %s686_s11, %s686_s11, %s687_s12  }
  0x44   :  { %677 = dma.done.wait [#allocation3], 128  }
  0x45   :  { %678 = vsyncadd [#allocation3], 4294967168 }
  0x46   :  { %679 = dma.done.wait [#allocation6], 2560  }
  0x47   :  { %680 = vsyncadd [#allocation6], 4294964736 }
  0x48   :  { %681 = dma.done.wait [#allocation9], 2048  }
  0x49   :  { %682 = vsyncadd [#allocation9], 4294965248  ;;  %v691_v0 = vmov 0.0|0.0   ;;  %vm692_vm0 = vmmov 0   ;;  %v693_v1 = vmov 0.0   ;;  %v81_v2 = vld [vmem:[#allocation5] sm:$0xff] }
  0x4a   :  { %501 = vmatprep.subr.bf16.mxu0 %v691_v0  ;;  %508 = vmatprep.subr.bf16.mxu1 %v691_v0  ;;  %v82_v3 = vld [vmem:[#allocation5 + $0x8] sm:$0xff]  ;;  %v83_v4 = vld [vmem:[#allocation5 + $0x10] sm:$0xff]  ;;  %v84_v6 = vld [vmem:[#allocation5 + $0x18] sm:$0x1]  ;;  %vm96_vm1 = vcmask 1040384   ;;  %vm694_vm2 = vmmov 1  }
  0x4b   :  { %428 = vmatprep.mubr.msk.f32.mxu0 %vm692_vm0, %v693_v1  ;;  %463 = vmatprep.mubr.msk.f32.mxu1 %vm692_vm0, %v693_v1  ;;  %v502_v5 = vpack.c.bf16 %v82_v3, %v81_v2  ;;  %v171_v7 = vld [vmem:[#allocation7] sm:$0xff]  ;;  %v172_v8 = vld [vmem:[#allocation7 + $0x8] sm:$0xff]  ;;  %v173_v9 = vld [vmem:[#allocation7 + $0x10] sm:$0xff]  ;;  %v505_v11 = vpack.c.bf16 %v84_v6, %v83_v4  ;;  %vm92_vm4 = vcmask 203776   ;;  %s695_s28 = smov [#allocation10]  }
  0x4c   :  { %v174_v10 = vld [vmem:[#allocation7 + $0x18] sm:$0xff]  ;;  %v509_v12 = vpack.c.bf16 %v172_v8, %v171_v7  ;;  %vm506_vm3 = vmpackc.low %vm96_vm1, %vm694_vm2  ;;  %v175_v14 = vld [vmem:[#allocation7 + $0x20] sm:$0xff]  ;;  %s365_s29 = sshll.u32 %s695_s28, 4  ;;  %s366_s29 = int_to_ptr.vmem [resolvable:$true] %s365_s29 }
  0x4d   :  { %503 = vmatpush3.bf16.msra.mxu0 %v502_v5  ;;  %v512_v13 = vpack.c.bf16 %v174_v10, %v173_v9  ;;  %v176_v15 = vld [vmem:[#allocation7 + $0x28] sm:$0xff]  ;;  %v80_v16 = vld [vmem:[#allocation2] sm:$0xff]  ;;  %v177_v18 = vld [vmem:[#allocation7 + $0x30] sm:$0xff]  ;;  %s655_s30 = scalar_lea.vmem %s366_s29, 128  ;;  %p660_p5 = scmp.lt.s32.totalorder %s366_s29, %s366_s29 }
  0x4e   :  { %504 = vmatprep.subr.bf16.mxu0 %v691_v0  ;;  %510 = vmatpush3.bf16.msra.mxu1 %v509_v12  ;;  %v515_v17 = vpack.c.bf16 %v176_v15, %v175_v14  ;;  %v178_v19 = vld [vmem:[#allocation7 + $0x38] sm:$0xff]  ;;  %v179_v21 = vld [vmem:[#allocation7 + $0x40] sm:$0xff]  ;;  %v180_v22 = vld [vmem:[#allocation7 + $0x48] sm:$0xff]  ;;  %p656_p4 = scmp.ne.s32.totalorder %s366_s29, %s655_s30  ;;  %p661_p6 = scmp.lt.s32.totalorder %s655_s30, %s655_s30 }
  0x4f   :  { %511 = vmatprep.subr.bf16.mxu1 %v691_v0  ;;  %v518_v20 = vpack.c.bf16 %v178_v19, %v177_v18  ;;  %v521_v23 = vpack.c.bf16 %v180_v22, %v179_v21  ;;  %v181_v24 = vld [vmem:[#allocation7 + $0x50] sm:$0xff]  ;;  %v182_v25 = vld [vmem:[#allocation7 + $0x58] sm:$0xff]  ;;  %v183_v27 = vld [vmem:[#allocation7 + $0x60] sm:$0xff] }
  0x50   :  { %v524_v26 = vpack.c.bf16 %v182_v25, %v181_v24  ;;  %v184_v28 = vld [vmem:[#allocation7 + $0x68] sm:$0xff]  ;;  %v185_v30 = vld [vmem:[#allocation7 + $0x70] sm:$0xff]  ;;  %v186_v31 = vld [vmem:[#allocation7 + $0x78] sm:$0xff]  ;;  %p662_p7 = por %p661_p6, %p660_p5 }
  0x51   :  { %507 = vmatpush3.bf16.msk.msra.mxu0 %vm506_vm3, %v505_v11  ;;  %v527_v29 = vpack.c.bf16 %v184_v28, %v183_v27  ;;  %v530_v32 = vpack.c.bf16 %v186_v31, %v185_v30  ;;  %v265_v33 = vld [vmem:[#allocation8] sm:$0xff]  ;;  %v266_v34 = vld [vmem:[#allocation8 + $0x8] sm:$0xff]  ;;  %v267_v35 = vld [vmem:[#allocation8 + $0x10] sm:$0xff] }
  0x52   :  { %532 = vmatprep.subr.bf16.mxu0 %v691_v0  ;;  %513 = vmatpush3.bf16.msra.mxu1 %v512_v13  ;;  %v533_v36 = vpack.c.bf16 %v266_v34, %v265_v33  ;;  %v268_v37 = vld [vmem:[#allocation8 + $0x18] sm:$0xff]  ;;  %v269_v39 = vld [vmem:[#allocation8 + $0x20] sm:$0xff]  ;;  %v270_v40 = vld [vmem:[#allocation8 + $0x28] sm:$0xff]  ;;  %p663_p8 = pnand %p662_p7, %p656_p4 }
  0x53   :  { %514 = vmatprep.subr.bf16.mxu1 %v691_v0  ;;  %v536_v38 = vpack.c.bf16 %v268_v37, %v267_v35  ;;  %v539_v41 = vpack.c.bf16 %v270_v40, %v269_v39  ;;  %v271_v42 = vld [vmem:[#allocation8 + $0x30] sm:$0xff]  ;;  %v272_v43 = vld [vmem:[#allocation8 + $0x38] sm:$0xff]  ;;  %v273_v45 = vld [vmem:[#allocation8 + $0x40] sm:$0xff] }
  0x54   :  { %429 = vmatmul.mubr.msk.f32.vlgmr.msra.gmra.mrb[0].mxu0 %vm92_vm4, %v80_v16  ;;  %v542_v44 = vpack.c.bf16 %v272_v43, %v271_v42  ;;  %v274_v46 = vld [vmem:[#allocation8 + $0x48] sm:$0xff]  ;;  %v275_v48 = vld [vmem:[#allocation8 + $0x50] sm:$0xff]  ;;  %v276_v49 = vld [vmem:[#allocation8 + $0x58] sm:$0xff] }
  0x55   :  { %498 = vmatprep.mubr.msk.f32.mxu0 %vm692_vm0, %v693_v1  ;;  %534 = vmatpush3.bf16.msra.mxu0 %v533_v36  ;;  %v545_v47 = vpack.c.bf16 %v274_v46, %v273_v45  ;;  %v548_v50 = vpack.c.bf16 %v276_v49, %v275_v48  ;;  %v277_v51 = vld [vmem:[#allocation8 + $0x60] sm:$0xff]  ;;  %v278_v52 = vld [vmem:[#allocation8 + $0x68] sm:$0xff]  ;;  %v376_v54 = vld [vmem:[%s837_s2] ss:$0 sm:$0xff] }
  0x56   :  { %516 = vmatpush3.bf16.msra.mxu1 %v515_v17  ;;  %535 = vmatprep.subr.bf16.mxu0 %v691_v0  ;;  %v551_v53 = vpack.c.bf16 %v278_v52, %v277_v51  ;;  %v279_v59 = vld [vmem:[#allocation8 + $0x70] sm:$0xff]  ;;  %v280_v60 = vld [vmem:[#allocation8 + $0x78] sm:$0xff] }
  0x57   :  { %517 = vmatprep.subr.bf16.mxu1 %v691_v0  ;;  %v554_v61 = vpack.c.bf16 %v280_v60, %v279_v59  ;;  %v379_v62 = vld [vmem:[%s839_s4] ss:$0 sm:$0xff] }
  0x58   :  { %v380_v3 = vld [vmem:[%s841_s6] ss:$0 sm:$0xff] }
  0x59   :  { %537 = vmatpush3.bf16.msra.mxu0 %v536_v38 }
  0x5a   :  { %519 = vmatpush3.bf16.msra.mxu1 %v518_v20  ;;  %538 = vmatprep.subr.bf16.mxu0 %v691_v0 }
  0x5b   :  { %520 = vmatprep.subr.bf16.mxu1 %v691_v0 }
  0x5d   :  { %540 = vmatpush3.bf16.msra.mxu0 %v539_v41 }
  0x5e   :  { %522 = vmatpush3.bf16.msra.mxu1 %v521_v23  ;;  %541 = vmatprep.subr.bf16.mxu0 %v691_v0 }
  0x5f   :  { %523 = vmatprep.subr.bf16.mxu1 %v691_v0 }
  0x61   :  { %543 = vmatpush3.bf16.msra.mxu0 %v542_v44 }
  0x62   :  { %525 = vmatpush3.bf16.msra.mxu1 %v524_v26  ;;  %544 = vmatprep.subr.bf16.mxu0 %v691_v0 }
  0x63   :  { %526 = vmatprep.subr.bf16.mxu1 %v691_v0 }
  0x65   :  { %546 = vmatpush3.bf16.msra.mxu0 %v545_v47 }
  0x66   :  { %528 = vmatpush3.bf16.msra.mxu1 %v527_v29  ;;  %547 = vmatprep.subr.bf16.mxu0 %v691_v0 }
  0x67   :  { %529 = vmatprep.subr.bf16.mxu1 %v691_v0 }
  0x69   :  { %549 = vmatpush3.bf16.msra.mxu0 %v548_v50 }
  0x6a   :  { %531 = vmatpush3.bf16.msra.mxu1 %v530_v32  ;;  %550 = vmatprep.subr.bf16.mxu0 %v691_v0 }
  0x6d   :  { %552 = vmatpush3.bf16.msra.mxu0 %v551_v53 }
  0x6e   :  { %553 = vmatprep.subr.bf16.mxu0 %v691_v0 }
  0x71   :  { %555 = vmatpush3.bf16.msra.mxu0 %v554_v61 }
 0x127   :  { %v166_v55 = vpop.f32.mrb[0].mxu0 }
 0x128   :  { %v167_v56 = vadd.f32 %v376_v54, %v166_v55  ;;  %v430_v57 = vpop.f32.mrb[1].mxu0 }
 0x12a   :  { %v170_v58 = vmax.f32 %v167_v56, 0.0 }
 0x12c   :  { %464 = vmatmul.mubr.f32.vlgmr.msra.gmra.mrb[0].mxu1 %v170_v58 }
 0x1ff   :  { %v260_v63 = vpop.f32.mrb[0].mxu1 }
 0x200   :  { %v261_v1 = vadd.f32 %v379_v62, %v260_v63  ;;  %v465_v0 = vpop.f32.mrb[1].mxu1 }
 0x202   :  { %v264_v2 = vmax.f32 %v261_v1, 0.0 }
 0x204   :  { %499 = vmatmul.mubr.f32.vlgmr.msra.gmra.mrb[2].mxu0 %v264_v2 }
 0x2d7   :  { %v354_v4 = vpop.f32.mrb[2].mxu0 }
 0x2d8   :  { %v355_v5 = vadd.f32 %v380_v3, %v354_v4  ;;  %v500_v6 = vpop.f32.mrb[3].mxu0 }
 0x2da   :  { %358 = vst [vmem:[#allocation10] sm:$0xff] %v355_v5 }
 0x2db   :  { %666 = shalt.err (!%p663_p8)
}
 0x2dc   :  { %s667_s9 = scalar_lea.hbm %s842_s7, 128 }
 0x2dd   :  { %p668_p9 = scmp.ne.s32.totalorder %s842_s7, %s667_s9  ;;  %p671_p10 = scmp.lt.u32.totalorder %s667_s9, %s842_s7 }
 0x2df   :  { %p673_p11 = pnand %p671_p10, %p668_p9 }
 0x2e1   :  { %676 = shalt.err (!%p673_p11)
}
 0x2e2   :  { %368 = dma.vmem_to_hbm [thread:$0]  %s366_s29, 128, %s842_s7, [#allocation4]  }
 0x2e3   :  { %683 = dma.done.wait [#allocation4], 128  }
 0x2e4   :  { %684 = vsyncadd [#allocation4], 4294967168 }
 0x2e5   :  { %372 = vsyncpa [#allocation3], 1 }
 0x2e6   :  { %373 = vsyncpa [#allocation6], 1 }
 0x2e7   :  { %374 = vsyncpa [#allocation9], 1 }
 0x2e8   :  { %375 = vsyncpa [#allocation4], 1 }

</bundles_post_ra>
